<compile_context>
chip_gen: v7x
topology: tpu7x:2x2x1
jax: 0.10.0
libtpu: 0.0.40
codegen_flags: <defaults>
</compile_context>

<pallas_src>
import functools
import math

import jax
import jax.numpy as jnp
from jax.experimental import pallas as pl
from jax.experimental.pallas import tpu as pltpu


def _round_up(x, m):
    return ((x + m - 1) // m) * m


def _qkv_kernel(x_ref, w_ref, b_ref, q_ref, k_ref, v_ref):
    """Fused Q/K/V projection for one (batch, seq-tile) grid step.

    x_ref:  (1, TS, H)  bf16 input rows
    w_ref:  (H, 3H)     bf16 packed [Wq*scale | Wk | Wv]   (x @ W layout)
    b_ref:  (1, 3H)     f32  packed [bq*scale | bk | bv]
    q/k/v_ref: (1, TS, H) bf16 outputs
    """
    hdim = q_ref.shape[-1]
    y = (jnp.dot(x_ref[0], w_ref[...], preferred_element_type=jnp.float32)
         + b_ref[...])                                               # (TS, 3H) f32
    q_ref[0] = y[:, :hdim].astype(q_ref.dtype)
    k_ref[0] = y[:, hdim:2 * hdim].astype(k_ref.dtype)
    v_ref[0] = y[:, 2 * hdim:].astype(v_ref.dtype)


def _attn_kernel(num_heads, head_size, s_valid, vis,
                 q_ref, k_ref, v_ref, wo_ref, bo_ref, out_ref, *rest):
    """Attention + output projection for one (batch, query-tile) grid step.

    q_ref:   (1, TQ, H)     bf16 query rows of this tile (Wq pre-scaled)
    k_ref:   (1, S_pad, H)  bf16 keys of this batch element
    v_ref:   (1, S_pad, H)  bf16 values of this batch element
    wo_ref:  (H, H)         bf16 output projection weight
    bo_ref:  (1, H)         f32 output projection bias
    out_ref: (1, TQ, H)     attention output tile
    rest:    (probs_ref?, ctx_ref)
      probs_ref: (1, nh, TQ, S_pad)  softmax probabilities (only if vis)
      ctx_ref:   (TQ, H) bf16 VMEM scratch (per-head context concat buffer)
    """
    if vis:
        probs_ref, ctx_ref = rest
    else:
        (ctx_ref,) = rest

    tq = q_ref.shape[1]
    s_pad = k_ref.shape[1]

    q = q_ref[0]                                                     # (TQ, H)
    k = k_ref[0]                                                     # (S_pad, H)
    v = v_ref[0]                                                     # (S_pad, H)

    # Additive key-padding mask (trace-time constant; only built if padded).
    if s_valid < s_pad:
        col = jax.lax.broadcasted_iota(jnp.int32, (tq, s_pad), 1)
        mask_bias = jnp.where(col < s_valid, 0.0, -1e30).astype(jnp.float32)
    else:
        mask_bias = None

    # Static loop over heads (<= 16 for ViT).  Each head's context is written
    # into its column slice of the bf16 ctx scratch; the output projection is
    # a single full-depth GEMM after the loop.
    for h in range(num_heads):
        lo = h * head_size
        hi = lo + head_size
        qh = q[:, lo:hi]                                             # (TQ, hd)
        kh = k[:, lo:hi]                                             # (S_pad, hd)
        vh = v[:, lo:hi]                                             # (S_pad, hd)

        # scores = q @ k^T without materializing a transpose.
        s = jax.lax.dot_general(qh, kh, (((1,), (1,)), ((), ())),
                                preferred_element_type=jnp.float32)   # (TQ, S_pad)
        if mask_bias is not None:
            s = s + mask_bias

        # numerically stable softmax (f32 math — v5e-safe).
        m = jnp.max(s, axis=-1, keepdims=True)
        e = jnp.exp(s - m)
        denom = jnp.sum(e, axis=-1, keepdims=True)
        if vis:
            # exact divide: the stored attention maps carry no approximation.
            p = e / denom
            probs_ref[0, h, :, :] = p.astype(probs_ref.dtype)
        else:
            # fast path: EUP approx reciprocal (separate issue slot).
            p = e * pl.reciprocal(denom, approx=True)

        ctx = jnp.dot(p.astype(jnp.bfloat16), vh,
                      preferred_element_type=jnp.float32)             # (TQ, hd)
        ctx_ref[:, lo:hi] = ctx.astype(ctx_ref.dtype)

    # One K=H output-projection GEMM (replaces per-head K=head_size matmuls
    # and the f32 accumulator read-modify-write passes).
    out_ref[0] = (jnp.dot(ctx_ref[...], wo_ref[...],
                          preferred_element_type=jnp.float32)
                  + bo_ref[...]).astype(out_ref.dtype)


def attention_forward(hidden_states, params, num_heads, *, vis=True,
                      q_tile=256, probs_dtype=jnp.bfloat16):
    """hidden_states: (B, S, H) float32.

    Returns (attention_output, weights) where weights is None when vis=False.
    probs_dtype defaults to bfloat16 (visualization-grade attention maps,
    half the HBM writeback); pass jnp.float32 if exact-precision maps matter.
    """
    B, S, H = hidden_states.shape
    assert H % num_heads == 0
    head_size = H // num_heads
    scale = 1.0 / math.sqrt(head_size)

    # Pad the sequence so stores are lane-dense (multiple of 128).  Use one
    # query tile per batch element when it fits (fewer grid steps); otherwise
    # tile by q_tile.  Padded keys are masked in-kernel; rows trimmed below.
    assert q_tile % 128 == 0
    if S <= 512:
        s_pad = _round_up(S, 128)
        tq = s_pad
    else:
        tq = q_tile
        s_pad = _round_up(S, tq)
    num_q_tiles = s_pad // tq

    x = hidden_states.astype(jnp.bfloat16)
    if s_pad != S:
        x = jnp.pad(x, ((0, 0), (0, s_pad - S), (0, 0)))

    # bf16 weights (MXU-native, half the DMA bytes); f32 biases.  Fold the
    # 1/sqrt(head_size) score scale into the Q projection.  Pack Q/K/V.
    w_qkv = jnp.concatenate(
        [params["wq"] * scale, params["wk"], params["wv"]], axis=1
    ).astype(jnp.bfloat16)                                            # (H, 3H)
    b_qkv = jnp.concatenate(
        [params["bq"] * scale, params["bk"], params["bv"]], axis=1
    ).astype(jnp.float32)                                             # (1, 3H)
    wo = params["wo"].astype(jnp.bfloat16)
    bo = params["bo"].astype(jnp.float32)

    cparams = pltpu.CompilerParams(
        dimension_semantics=("parallel", "parallel"),
        vmem_limit_bytes=64 * 1024 * 1024,
    )

    # ---- kernel 1: fused Q/K/V projection (fully parallel grid) ----
    ts = tq
    q, k, v = pl.pallas_call(
        _qkv_kernel,
        out_shape=tuple(jax.ShapeDtypeStruct((B, s_pad, H), jnp.bfloat16)
                        for _ in range(3)),
        grid_spec=pltpu.PrefetchScalarGridSpec(
            num_scalar_prefetch=0,
            grid=(B, s_pad // ts),
            in_specs=[
                pl.BlockSpec((1, ts, H), lambda b, si: (b, si, 0)),
                pl.BlockSpec((H, 3 * H), lambda b, si: (0, 0)),
                pl.BlockSpec((1, 3 * H), lambda b, si: (0, 0)),
            ],
            out_specs=[
                pl.BlockSpec((1, ts, H), lambda b, si: (b, si, 0)),
                pl.BlockSpec((1, ts, H), lambda b, si: (b, si, 0)),
                pl.BlockSpec((1, ts, H), lambda b, si: (b, si, 0)),
            ],
        ),
        compiler_params=cparams,
    )(x, w_qkv, b_qkv)

    # ---- kernel 2: attention + output projection (fully parallel grid) ----
    kernel = functools.partial(_attn_kernel, num_heads, head_size, S, vis)

    out_shapes = [jax.ShapeDtypeStruct((B, s_pad, H), hidden_states.dtype)]
    out_specs = [pl.BlockSpec((1, tq, H), lambda b, qi: (b, qi, 0))]
    if vis:
        out_shapes.append(
            jax.ShapeDtypeStruct((B, num_heads, s_pad, s_pad), probs_dtype))
        out_specs.append(
            pl.BlockSpec((1, num_heads, tq, s_pad), lambda b, qi: (b, 0, qi, 0)))

    results = pl.pallas_call(
        kernel,
        out_shape=tuple(out_shapes),
        grid_spec=pltpu.PrefetchScalarGridSpec(
            num_scalar_prefetch=0,
            grid=(B, num_q_tiles),
            in_specs=[
                pl.BlockSpec((1, tq, H), lambda b, qi: (b, qi, 0)),     # Q tile
                pl.BlockSpec((1, s_pad, H), lambda b, qi: (b, 0, 0)),   # full K
                pl.BlockSpec((1, s_pad, H), lambda b, qi: (b, 0, 0)),   # full V
                pl.BlockSpec((H, H), lambda b, qi: (0, 0)),             # W_out
                pl.BlockSpec((1, H), lambda b, qi: (0, 0)),             # b_out
            ],
            out_specs=out_specs,
            scratch_shapes=[pltpu.VMEM((tq, H), jnp.bfloat16)],         # ctx concat
        ),
        compiler_params=cparams,
    )(q, k, v, wo, bo)

    # Trim padding back to the caller's shapes.
    if vis:
        out_pad, probs_pad = results
        return out_pad[:, :S, :], probs_pad[:, :, :S, :S]
    (out_pad,) = results
    return out_pad[:, :S, :], None
    # TODO(synk): attn_dropout / proj_dropout are eval-mode identities here.


def init_params(key, hidden_size):
    """Deterministic synthetic params (PyTorch Linear shapes (out,in)+(out,)),
    stored pre-transposed to (in, out) so kernels compute x @ W + b."""
    keys = jax.random.split(key, 8)
    scale = 0.02

    def w(k):
        return (scale * jax.random.normal(k, (hidden_size, hidden_size),
                                          jnp.float32)).T

    def b(k):
        return scale * jax.random.normal(k, (1, hidden_size), jnp.float32)

    return {
        "wq": w(keys[0]), "bq": b(keys[1]),
        "wk": w(keys[2]), "bk": b(keys[3]),
        "wv": w(keys[4]), "bv": b(keys[5]),
        "wo": w(keys[6]), "bo": b(keys[7]),
    }


def _reference(hidden_states, params, num_heads):
    """Pure-JAX f32 reference mirroring the PyTorch forward (dropout = identity)."""
    B, S, H = hidden_states.shape
    hd = H // num_heads

    def proj(x, w, b):
        return jnp.einsum("bsh,ho->bso", x, w) + b[0]

    q = proj(hidden_states, params["wq"], params["bq"])
    k = proj(hidden_states, params["wk"], params["bk"])
    v = proj(hidden_states, params["wv"], params["bv"])

    def split(x):  # (B,S,H) -> (B,nh,S,hd)
        return x.reshape(B, S, num_heads, hd).transpose(0, 2, 1, 3)

    qh, kh, vh = split(q), split(k), split(v)
    scores = jnp.einsum("bnqd,bnkd->bnqk", qh, kh) / math.sqrt(hd)
    probs = jax.nn.softmax(scores, axis=-1)
    ctx = jnp.einsum("bnqk,bnkd->bnqd", probs, vh)
    ctx = ctx.transpose(0, 2, 1, 3).reshape(B, S, H)
    out = jnp.einsum("bsh,ho->bso", ctx, params["wo"]) + params["bo"][0]
    return out, probs


if __name__ == "__main__":
    B, S, H = 2, 8, 32
    NUM_HEADS = 4  # head_size = 8

    key = jax.random.PRNGKey(0)
    k_x, k_p = jax.random.split(key)

    hidden_states = jax.random.normal(k_x, (B, S, H), jnp.float32)
    params = init_params(k_p, H)

    # vis=True path (returns attention maps)
    out, weights = attention_forward(hidden_states, params, NUM_HEADS, vis=True)
    out = jax.block_until_ready(out)
    weights = jax.block_until_ready(weights)

    ref_out, ref_w = _reference(hidden_states, params, NUM_HEADS)
    assert out.shape == ref_out.shape and weights.shape == ref_w.shape
    # kernel uses bf16 matmul inputs (f32 accumulation) and bf16 attention
    # maps, so tolerance is relaxed accordingly.
    assert jnp.allclose(out, ref_out, atol=2e-2, rtol=2e-2), "output mismatch"
    assert jnp.allclose(weights.astype(jnp.float32), ref_w,
                        atol=2e-2, rtol=2e-2), "weights mismatch"

    # vis=False fast path (no probs output, approx reciprocal)
    out2, weights2 = attention_forward(hidden_states, params, NUM_HEADS, vis=False)
    out2 = jax.block_until_ready(out2)
    assert weights2 is None
    assert jnp.allclose(out2, ref_out, atol=2e-2, rtol=2e-2), "vis=False mismatch"

    print("KERNEL_OK")
</pallas_src>

<mosaic_0001>
module attributes {stable_mosaic.version = 11 : i64} {
  func.func @_qkv_kernel(%arg0: i32, %arg1: i32, %arg2: memref<1x128x32xbf16, #tpu.memory_space<vmem>>, %arg3: memref<32x96xbf16, #tpu.memory_space<vmem>>, %arg4: memref<1x96xf32, #tpu.memory_space<vmem>>, %arg5: memref<1x128x32xbf16, #tpu.memory_space<vmem>>, %arg6: memref<1x128x32xbf16, #tpu.memory_space<vmem>>, %arg7: memref<1x128x32xbf16, #tpu.memory_space<vmem>>) attributes {dimension_semantics = [#tpu.dimension_semantics<parallel>, #tpu.dimension_semantics<parallel>], iteration_bounds = array<i64: 2, 1>, scalar_prefetch = 0 : i64, scratch_operands = 0 : i64, tpu.core_type = #tpu.core_type<tc>, window_params = [{transform_indices = @transform_0, window_bounds = array<i64: 1, 128, 32>}, {pipeline_mode = #tpu.pipeline_mode<synchronous>, transform_indices = @transform_1, window_bounds = array<i64: 32, 96>}, {pipeline_mode = #tpu.pipeline_mode<synchronous>, transform_indices = @transform_2, window_bounds = array<i64: 1, 96>}, {transform_indices = @transform_3, window_bounds = array<i64: 1, 128, 32>}, {transform_indices = @transform_4, window_bounds = array<i64: 1, 128, 32>}, {transform_indices = @transform_5, window_bounds = array<i64: 1, 128, 32>}]} {
    %c0 = arith.constant 0 : index
    %c0_0 = arith.constant 0 : index
    %c0_1 = arith.constant 0 : index
    %0 = vector.load %arg2[%c0, %c0_0, %c0_1] : memref<1x128x32xbf16, #tpu.memory_space<vmem>>, vector<1x128x32xbf16>
    %1 = vector.shape_cast %0 : vector<1x128x32xbf16> to vector<128x32xbf16>
    %c0_2 = arith.constant 0 : index
    %c0_3 = arith.constant 0 : index
    %2 = vector.load %arg3[%c0_2, %c0_3] : memref<32x96xbf16, #tpu.memory_space<vmem>>, vector<32x96xbf16>
    %cst = arith.constant dense<0.000000e+00> : vector<128x96xf32>
    %3 = tpu.matmul %1, %2, %cst {dimension_numbers = #tpu.dot_dimension_numbers<[1], [0], [0], [1], [0, 0, 1, 1], [], []>} : vector<128x32xbf16>, vector<32x96xbf16>, vector<128x96xf32> -> vector<128x96xf32>
    %c0_4 = arith.constant 0 : index
    %c0_5 = arith.constant 0 : index
    %4 = vector.load %arg4[%c0_4, %c0_5] : memref<1x96xf32, #tpu.memory_space<vmem>>, vector<1x96xf32>
    %5 = vector.broadcast %4 : vector<1x96xf32> to vector<128x96xf32>
    %6 = arith.addf %3, %5 : vector<128x96xf32>
    %7 = vector.extract_strided_slice %6 {offsets = [0, 0], sizes = [128, 32], strides = [1, 1]} : vector<128x96xf32> to vector<128x32xf32>
    %8 = arith.truncf %7 : vector<128x32xf32> to vector<128x32xbf16>
    %c0_6 = arith.constant 0 : index
    %c0_7 = arith.constant 0 : index
    %c0_8 = arith.constant 0 : index
    %9 = vector.load %arg5[%c0_6, %c0_7, %c0_8] : memref<1x128x32xbf16, #tpu.memory_space<vmem>>, vector<1x128x32xbf16>
    %10 = vector.shape_cast %9 : vector<1x128x32xbf16> to vector<128x32xbf16>
    %11 = vector.shape_cast %8 : vector<128x32xbf16> to vector<1x128x32xbf16>
    tpu.vector_store %arg5[%c0_6, %c0_7, %c0_8], %11 {strides = array<i32>} : memref<1x128x32xbf16, #tpu.memory_space<vmem>>, vector<1x128x32xbf16>,
    %12 = vector.extract_strided_slice %6 {offsets = [0, 32], sizes = [128, 32], strides = [1, 1]} : vector<128x96xf32> to vector<128x32xf32>
    %13 = arith.truncf %12 : vector<128x32xf32> to vector<128x32xbf16>
    %c0_9 = arith.constant 0 : index
    %c0_10 = arith.constant 0 : index
    %c0_11 = arith.constant 0 : index
    %14 = vector.load %arg6[%c0_9, %c0_10, %c0_11] : memref<1x128x32xbf16, #tpu.memory_space<vmem>>, vector<1x128x32xbf16>
    %15 = vector.shape_cast %14 : vector<1x128x32xbf16> to vector<128x32xbf16>
    %16 = vector.shape_cast %13 : vector<128x32xbf16> to vector<1x128x32xbf16>
    tpu.vector_store %arg6[%c0_9, %c0_10, %c0_11], %16 {strides = array<i32>} : memref<1x128x32xbf16, #tpu.memory_space<vmem>>, vector<1x128x32xbf16>,
    %17 = vector.extract_strided_slice %6 {offsets = [0, 64], sizes = [128, 32], strides = [1, 1]} : vector<128x96xf32> to vector<128x32xf32>
    %18 = arith.truncf %17 : vector<128x32xf32> to vector<128x32xbf16>
    %c0_12 = arith.constant 0 : index
    %c0_13 = arith.constant 0 : index
    %c0_14 = arith.constant 0 : index
    %19 = vector.load %arg7[%c0_12, %c0_13, %c0_14] : memref<1x128x32xbf16, #tpu.memory_space<vmem>>, vector<1x128x32xbf16>
    %20 = vector.shape_cast %19 : vector<1x128x32xbf16> to vector<128x32xbf16>
    %21 = vector.shape_cast %18 : vector<128x32xbf16> to vector<1x128x32xbf16>
    tpu.vector_store %arg7[%c0_12, %c0_13, %c0_14], %21 {strides = array<i32>} : memref<1x128x32xbf16, #tpu.memory_space<vmem>>, vector<1x128x32xbf16>,
    return
  }
  func.func @transform_0(%arg0: i32, %arg1: i32) -> (i32, i32, i32) {
    %c0_i32 = arith.constant 0 : i32
    %c0_i32_0 = arith.constant 0 : i32
    return %arg0, %arg1, %c0_i32 : i32, i32, i32
  }
  func.func @transform_1(%arg0: i32, %arg1: i32) -> (i32, i32) {
    %c0_i32 = arith.constant 0 : i32
    %c0_i32_0 = arith.constant 0 : i32
    %c0_i32_1 = arith.constant 0 : i32
    return %c0_i32, %c0_i32_0 : i32, i32
  }
  func.func @transform_2(%arg0: i32, %arg1: i32) -> (i32, i32) {
    %c0_i32 = arith.constant 0 : i32
    %c0_i32_0 = arith.constant 0 : i32
    %c0_i32_1 = arith.constant 0 : i32
    return %c0_i32, %c0_i32_0 : i32, i32
  }
  func.func @transform_3(%arg0: i32, %arg1: i32) -> (i32, i32, i32) {
    %c0_i32 = arith.constant 0 : i32
    %c0_i32_0 = arith.constant 0 : i32
    return %arg0, %arg1, %c0_i32 : i32, i32, i32
  }
  func.func @transform_4(%arg0: i32, %arg1: i32) -> (i32, i32, i32) {
    %c0_i32 = arith.constant 0 : i32
    %c0_i32_0 = arith.constant 0 : i32
    return %arg0, %arg1, %c0_i32 : i32, i32, i32
  }
  func.func @transform_5(%arg0: i32, %arg1: i32) -> (i32, i32, i32) {
    %c0_i32 = arith.constant 0 : i32
    %c0_i32_0 = arith.constant 0 : i32
    return %arg0, %arg1, %c0_i32 : i32, i32, i32
  }
}

</mosaic_0001>

<bundles_post_ra>
// kernel: tpu_custom_call.1
= control target key start
LH: loop header
LB: loop body
LE: loop exit
PB: predicated region body
PF: predicated region fallthrough
CT: control target
= control target key end

     0   :  { %11 = vsyncpa [#allocation3], 0  ;;  %s1962_s0 = inlined_call_operand.hbm [shape: bf16[2,128,32], index: 0, kind: input, shape index: {}]   ;;  %s1963_s1 = inlined_call_operand.hbm [shape: bf16[32,96], index: 1, kind: input, shape index: {}]   ;;  %s1964_s2 = inlined_call_operand.hbm [shape: f32[1,96], index: 2, kind: input, shape index: {}]   ;;  %s1965_s3 = inlined_call_operand.hbm [shape: bf16[2,128,32], index: 3, kind: output, shape index: {0}]   ;;  %s1966_s4 = inlined_call_operand.hbm [shape: bf16[2,128,32], index: 4, kind: output, shape index: {1}]   ;;  %s1967_s5 = inlined_call_operand.hbm [shape: bf16[2,128,32], index: 5, kind: output, shape index: {2}]  }
   0x1   :  { %13 = vsyncpa [#allocation3 + $0x1], 0 }
   0x2   :  { %14 = vsyncpa [#allocation6], 0 }
   0x3   :  { %15 = vsyncpa [#allocation4], 0 }
   0x4   :  { %17 = vsyncpa [#allocation4 + $0x1], 0 }
   0x5   :  { %18 = vsyncpa [#allocation10], 0 }
   0x6   :  { %20 = vsyncpa [#allocation10 + $0x1], 0  ;;  %s1459_s18 = smov 0   ;;  %s1461_s19 = smov 0  }
   0x7   :  { %s1463_s20 = smov 0   ;;  %s1465_s21 = smov 0  }
   0x8   :  { %s1467_s22 = smov 0   ;;  %s1469_s23 = smov 0  }
   0x9 LB: > { %s1490_s24 = sadd.s32 4294967295, %s1416_s23   ;;  %s1969_s25 = sadd.s32 4294967294, %s1416_s23   ;;  %s1416_s23 = sphi %s1469_s23, %s26_s23   ;;  %s1412_s22 = sphi %s1467_s22, %s1992_s22   ;;  %s1408_s21 = sphi %s1465_s21, %s1991_s21   ;;  %s1404_s20 = sphi %s1463_s20, %s1990_s20   ;;  %s1400_s19 = sphi %s1461_s19, %s1989_s19   ;;  %s1396_s18 = sphi %s1459_s18, %s1988_s18  }
   0xa   : > { %p60_p0 = scmp.ne.s32.totalorder %s1400_s19, %s1396_s18  ;;  %p1968_p1 = scmp.eq.s32.totalorder %s1490_s24, 0 }
   0xb   : > { %p134_p3 = scmp.eq.s32.totalorder %s1969_s25, 1  ;;  %p962_p5 = scmp.ge.s32.totalorder %s1416_s23, 1 }
   0xc   : > { %p1501_p4 = por %p1968_p1, %p60_p0  ;;  %p197_p7 = scmp.lt.s32.totalorder %s1416_s23, 3 }
   0xd   : > { %p1506_p6 = por %p134_p3, %p60_p0  ;;  %s1418_s29 = smov [#allocation5]  }
   0xe   : > { %s1973_s26 = scalar_select %p1501_p4, 1, 0 }
   0xf   : > { %s1974_s27 = scalar_select %p1506_p6, 1, 0 }
  0x10   : > { %p1511_p8 = pnand %p962_p5, %p197_p7  ;;  %s209_s30 = sshll.u32 %s1418_s29, 4  ;;  %s1515_s30 = int_to_ptr.vmem [resolvable:$true] %s209_s30 }
  0x11   : > { %s1419_s7 = smov [#allocation7]   ;;  %s1184_s11 = scalar_lea.hbm %s1963_s1, 256 }
  0x12   : > { %p1092_p9 = pneg %p1511_p8  ;;  %s223_s8 = sshll.u32 %s1419_s7, 4  ;;  %s1526_s8 = int_to_ptr.vmem [resolvable:$true] %s223_s8 }
  0x13   : > { %p1185_p12 = scmp.ne.s32.totalorder %s1963_s1, %s1184_s11  ;;  %p1191_p5 = scmp.lt.u32.totalorder %s1184_s11, %s1963_s1 }
  0x14   : > { %p1522_p11 = pnand %p1092_p9, %p1968_p1 }
  0x16   : > { %p1186_p13 = pneg %p1522_p11 }
  0x18   : > { %p1187_p0 = pnand %p1186_p13, %p1185_p12 }
  0x1a   : > { %p1188_p3 = pneg %p1187_p0 }
  0x1c   : > { %p1193_p7 = pnand %p1191_p5, %p1188_p3 }
  0x1e   : > { %1196 = shalt.err (!%p1193_p7)
}
  0x1f   : > { %s1197_s16 = scalar_lea.vmem %s1515_s30, 256  ;;  %p1205_p2 = scmp.lt.s32.totalorder %s1515_s30, %s1515_s30 }
  0x20   : > { %p1198_p9 = scmp.ne.s32.totalorder %s1515_s30, %s1197_s16  ;;  %p1206_p12 = scmp.lt.s32.totalorder %s1197_s16, %s1197_s16 }
  0x22   : > { %p1200_p10 = pnand %p1198_p9, %p1186_p13  ;;  %p1207_p0 = por %p1206_p12, %p1205_p2 }
  0x24   : > { %p1201_p1 = pneg %p1200_p10 }
  0x26   : > { %p1208_p6 = pnand %p1207_p0, %p1201_p1 }
  0x28   : > { %1211 = shalt.err (!%p1208_p6)
}
  0x29   : > { %s1970_s17 = smov 64   ;;  %s1421_s29 = smov 4  }
  0x2a   : > { %1095 = dma.hbm_to_vmem [thread:$0]  (!%p1522_p11), %s1963_s1, 256, %s1515_s30, [#allocation6], %s1970_s17, %s1970_s17, %s1421_s29  }
  0x2b   : > { %s1212_s12 = scalar_lea.hbm %s1964_s2, 16 }
  0x2c   : > { %p1213_p1 = scmp.ne.s32.totalorder %s1964_s2, %s1212_s12  ;;  %p1219_p10 = scmp.lt.u32.totalorder %s1212_s12, %s1964_s2 }
  0x2e   : > { %p1215_p2 = pnand %p1213_p1, %p1186_p13 }
  0x30   : > { %p1216_p6 = pneg %p1215_p2 }
  0x32   : > { %p1221_p3 = pnand %p1219_p10, %p1216_p6 }
  0x34   : > { %1224 = shalt.err (!%p1221_p3)
}
  0x35   : > { %s1225_s30 = scalar_lea.vmem %s1526_s8, 16  ;;  %s1232_s7 = scalar_lea.vmem %s1526_s8, 32 }
  0x36   : > { %p1226_p5 = scmp.ne.s32.totalorder %s1526_s8, %s1225_s30  ;;  %p1233_p12 = scmp.lt.s32.totalorder %s1526_s8, %s1526_s8 }
  0x37   : > { %p1234_p0 = scmp.lt.s32.totalorder %s1232_s7, %s1225_s30 }
  0x38   : > { %p1228_p7 = pnand %p1226_p5, %p1186_p13 }
  0x39   : > { %p1235_p1 = por %p1234_p0, %p1233_p12 }
  0x3a   : > { %p1229_p9 = pneg %p1228_p7 }
  0x3c   : > { %p1236_p2 = pnand %p1235_p1, %p1229_p9 }
  0x3e   : > { %1239 = shalt.err (!%p1236_p2)
}
  0x3f   : > { %1098 = dma.hbm_to_vmem [thread:$0]  (!%p1522_p11), %s1964_s2, 16, %s1526_s8, [#allocation6]  }
  0x40   : > { %s38_s11 = sadd.s32 1, %s1412_s22  ;;  %s47_s12 = sadd.s32 1, %s1404_s20 }
  0x41   : > { %p40_p13 = scmp.ge.s32.totalorder %s38_s11, 2  ;;  %p54_p6 = scmp.ne.s32.totalorder %s1404_s20, %s1400_s19 }
  0x42   : > { %p55_p10 = scmp.eq.s32.totalorder %s1416_s23, 0  ;;  %p1115_p3 = scmp.lt.s32.totalorder %s1416_s23, 2 }
  0x43   : > { %s1994_s11 = smov (%p40_p13, %s38_s11), 0  ;;  %p1977_p7 = scmp.eq.s32.totalorder %s1490_s24, 1 }
  0x44   : > { %p56_p5 = por %p55_p10, %p54_p6  ;;  %s42_s13 = ssub.s32 %s1412_s22, %s1994_s11 }
  0x45   : > { %p1594_p9 = por %p1977_p7, %p54_p6  ;;  %s234_s14 = sand.u32 1, %s1404_s20  }
  0x46   : > { %p45_p12 = scmp.eq.s32.totalorder %s42_s13, 0  ;;  %s966_s8 = sshll.u32 %s234_s14, 6 }
  0x47   : > { %s1978_s6 = scalar_select %p1594_p9, 1, 0 }
  0x48   : > { %s1022_s15 = sshll.u32 %s1412_s22, 10  ;;  %s238_s10 = scalar_lea.vmem [#allocation2], %s966_s8 }
  0x49   : > { %s1603_s16 = scalar_select %p45_p12, %s1404_s20, %s47_s12  }
  0x4a   : > { %s1608_s9 = scalar_lea.hbm %s1962_s0, %s1022_s15  ;;  %s247_s25 = sshll.u32 %s238_s10, 4  ;;  %s1616_s25 = int_to_ptr.vmem [resolvable:$true] %s247_s25 }
  0x4b   : > { %p1612_p11 = pnand %p1115_p3, %p56_p5  ;;  %s1618_s12 = scalar_lea.sflag [#allocation3], %s234_s14 }
  0x4c   : > { %s1240_s13 = scalar_lea.hbm %s1608_s9, 1024  ;;  %s1245_s30 = scalar_lea.hbm %s1962_s0, 2048 }
  0x4d   : > { %p1241_p0 = scmp.ne.s32.totalorder %s1608_s9, %s1240_s13  ;;  %p1242_p1 = pneg %p1612_p11 }
  0x4e   : > { %p1246_p6 = scmp.lt.u32.totalorder %s1608_s9, %s1962_s0  ;;  %p1247_p10 = scmp.lt.u32.totalorder %s1245_s30, %s1240_s13 }
  0x4f   : > { %p1243_p2 = pnand %p1242_p1, %p1241_p0  ;;  %p1249_p5 = scmp.lt.u32.totalorder %s1240_s13, %s1608_s9 }
  0x50   : > { %p1248_p3 = por %p1247_p10, %p1246_p6 }
  0x51   : > { %p1244_p13 = pneg %p1243_p2 }
  0x52   : > { %p1250_p7 = por %p1249_p5, %p1248_p3 }
  0x54   : > { %p1251_p12 = pnand %p1250_p7, %p1244_p13 }
  0x56   : > { %1254 = shalt.err (!%p1251_p12)
}
  0x57   : > { %s1255_s14 = scalar_lea.vmem %s1616_s25, 1024  ;;  %s1422_s8 = smov [#allocation2]  }
  0x58   : > { %p1256_p0 = scmp.ne.s32.totalorder %s1616_s25, %s1255_s14  ;;  %s1260_s15 = sshll.u32 %s1422_s8, 4  ;;  %s1261_s15 = int_to_ptr.vmem [resolvable:$false] %s1260_s15 }
  0x59   : > { %s1262_s7 = scalar_lea.vmem %s1261_s15, 2048  ;;  %p1263_p4 = scmp.lt.s32.totalorder %s1616_s25, %s1261_s15 }
  0x5a   : > { %p1258_p2 = pnand %p1256_p0, %p1242_p1  ;;  %p1264_p6 = scmp.lt.s32.totalorder %s1262_s7, %s1255_s14 }
  0x5c   : > { %p1259_p9 = pneg %p1258_p2  ;;  %p1265_p10 = por %p1264_p6, %p1263_p4 }
  0x5e   : > { %p1266_p3 = pnand %p1265_p10, %p1259_p9 }
  0x60   : > { %1269 = shalt.err (!%p1266_p3)
}
  0x61   : > { %s1980_s13 = smov 64   ;;  %259 = sbr.rel (%p1511_p8) target bundleno = 533 (0x215), region = 32 }
  0x62   : > { %1102 = dma.hbm_to_vmem [thread:$0]  (!%p1612_p11), %s1608_s9, 1024, %s1616_s25, %s1618_s12, %s1980_s13, %s1980_s13, %s1421_s29  }
  0x63   : > { %s1652_s30 = sand.u32 (!%p1511_p8), 1, %s1400_s19   ;;  %p1981_p4 = scmp.ne.s32.totalorder (!%p1511_p8), %s1973_s26, 0 }
  0x64   : > { %s1655_s10 = sshll.u32 (!%p1511_p8), %s1652_s30, 6  ;;  %s262_s17 = scalar_lea.sflag (!%p1511_p8), [#allocation3], %s1652_s30 }
  0x65   : > { %s265_s14 = scalar_lea.vmem (!%p1511_p8), [#allocation2], %s1655_s10 }
  0x68   : > { %1379 = dma.done.wait (%p1981_p4), %s262_s17, 1024  }
  0x69   : > { %1381 = vsyncadd (%p1981_p4), %s262_s17, 4294966272  ;;  %p1982_p9 = scmp.eq.s32.totalorder %s1490_s24, 0 }
  0x6b   : > { %1383 = dma.done.wait (%p1982_p9), [#allocation6], 272   ;;  %p1983_p8 = pmov %p1982_p9 }
  0x6c   : > { %v1174_v0 = vld [vmem:[#allocation5] sm:$0xff]   ;;  %v1175_v1 = vld [vmem:[#allocation5 + $0x8] sm:$0xff]   ;;  %vm394_vm0 = vcmask 261120   ;;  %v1180_v6 = vld [vmem:[%s265_s14 + $0x10] sm:$0xff]   ;;  %vm580_vm1 = vcmask 257024   ;;  %s1676_s25 = scalar_lea.vmem [#allocation8], %s1655_s10 }
  0x6d   : > { %1385 = vsyncadd (%p1983_p8), [#allocation6], 4294967024  ;;  %1052 = vmatprep.subr.bf16.mxu0 %v1174_v0  ;;  %1072 = vmatprep.subr.bf16.mxu1 %v1174_v0  ;;  %v1176_v2 = vld [vmem:[%s265_s14] sm:$0xff]   ;;  %v1178_v4 = vld [vmem:[%s265_s14 + $0x8] sm:$0xff]   ;;  %s1423_s26 = smov 96   ;;  %s1424_s28 = smov 64  }
  0x6e   : > { %1053 = vmatpush3.bf16.msra.mxu0 %v1174_v0  ;;  %1074 = vmatpush3.bf16.msra.mxu1 %v1174_v0  ;;  %v1177_v3 = vld [vmem:[%s265_s14 + $0x20] sm:$0xff]   ;;  %v1179_v5 = vld [vmem:[%s265_s14 + $0x28] sm:$0xff]   ;;  %v1182_v7 = vld [vmem:[%s265_s14 + $0x30] sm:$0xff]   ;;  %s1746_s29 = sshll.u32 %s1408_s21, 10  ;;  %s751_s15 = sshll.u32 %s1676_s25, 4  ;;  %s1758_s15 = int_to_ptr.vmem [resolvable:$true] %s751_s15 }
  0x6f   : > { %1054 = vmatprep.subr.bf16.mxu0 %v1175_v1  ;;  %1073 = vmatprep.subr.bf16.mxu1 %v1175_v1  ;;  %v1181_v8 = vld [vmem:[%s265_s14 + $0x18] sm:$0xff]   ;;  %v976_v10 = vld [vmem:[#allocation7] ss:$0 sm:$0xff]  ;;  %s1755_s8 = scalar_lea.hbm %s1965_s3, %s1746_s29  ;;  %s726_s21 = scalar_lea.sflag [#allocation4], %s1652_s30 }
  0x70   : > { %1056 = vmatprep.mubr.msk.bf16.mxu0 %vm394_vm0, %v1176_v2  ;;  %1064 = vmatprep.mubr.msk.bf16.mxu1 %vm394_vm0, %v1177_v3  ;;  %v1183_v9 = vld [vmem:[%s265_s14 + $0x38] sm:$0xff]   ;;  %s1270_s7 = scalar_lea.vmem %s1758_s15, 1024  ;;  %p1984_p1 = scmp.ne.s32.totalorder %s1978_s6, 0 }
  0x71   : > { %p1271_p11 = scmp.ne.s32.totalorder %s1758_s15, %s1270_s7  ;;  %s1425_s13 = smov [#allocation8]  }
  0x72   : > { %1055 = vmatpush3.bf16.msra.mxu0 %v1175_v1  ;;  %1075 = vmatpush3.bf16.msra.mxu1 %v1175_v1  ;;  %s1274_s17 = sshll.u32 %s1425_s13, 4  ;;  %s1275_s17 = int_to_ptr.vmem [resolvable:$false] %s1274_s17 }
  0x73   : > { %p1272_p13 = pnand %p1271_p11, %p1984_p1  ;;  %s1276_s14 = scalar_lea.vmem %s1275_s17, 2048 }
  0x74   : > { %p1277_p7 = scmp.lt.s32.totalorder %s1758_s15, %s1275_s17  ;;  %p1278_p12 = scmp.lt.s32.totalorder %s1276_s14, %s1270_s7 }
  0x75   : > { %1057 = vmatmul.mubr.msk.bf16.vlgmr.msra.gmra.mrb[0].mxu0 %vm394_vm0, %v1178_v4  ;;  %1065 = vmatmul.mubr.msk.bf16.vlgmr.msra.gmra.mrb[0].mxu1 %vm394_vm0, %v1179_v5  ;;  %p1273_p5 = pneg %p1272_p13 }
  0x76   : > { %1060 = vmatprep.mubr.msk.bf16.mxu0 %vm394_vm0, %v1180_v6  ;;  %1068 = vmatprep.mubr.msk.bf16.mxu1 %vm394_vm0, %v1182_v7  ;;  %p1279_p0 = por %p1278_p12, %p1277_p7 }
  0x78   : > { %p1280_p2 = pnand %p1279_p0, %p1273_p5 }
  0x7d   : > { %1061 = vmatmul.mubr.msk.bf16.gmra.mrb[4].mxu0 %vm394_vm0, %v1181_v8  ;;  %1069 = vmatmul.mubr.msk.bf16.gmra.mrb[4].mxu1 %vm394_vm0, %v1183_v9 }
 0x148   : > { %v1058_v11 = vpop.f32.mrb[0].mxu0  ;;  %v1066_v12 = vpop.f32.mrb[0].mxu1 }
 0x149   : > { %v462_v13 = vadd.f32 %v1058_v11, %v976_v10  ;;  %v494_v14 = vadd.f32 %v1066_v12, %v976_v10  ;;  %v453_v15 = vpop.f32.mrb[1].mxu0  ;;  %v485_v16 = vpop.f32.mrb[1].mxu1 }
 0x14a   : > { %v454_v17 = vadd.f32 %v976_v10, %v453_v15  ;;  %v486_v18 = vadd.f32 %v976_v10, %v485_v16  ;;  %v1059_v19 = vpop.f32.mrb[2].mxu0  ;;  %v1067_v20 = vpop.f32.mrb[2].mxu1 }
 0x14b   : > { %v1025_v21 = vpack.c.bf16 %v462_v13, %v462_v13  ;;  %v1033_v22 = vpack.c.bf16 %v494_v14, %v494_v14  ;;  %v465_v23 = vadd.f32 %v1059_v19, %v976_v10  ;;  %v497_v24 = vadd.f32 %v1067_v20, %v976_v10  ;;  %v456_v25 = vpop.f32.mrb[3].mxu0  ;;  %v488_v26 = vpop.f32.mrb[3].mxu1 }
 0x14c   : > { %v1023_v27 = vpack.c.bf16 %v454_v17, %v454_v17  ;;  %v1031_v28 = vpack.c.bf16 %v486_v18, %v486_v18  ;;  %v457_v29 = vadd.f32 %v976_v10, %v456_v25  ;;  %v489_v30 = vadd.f32 %v976_v10, %v488_v26 }
 0x14d   : > { %583 = vst.msk [vmem:[%s1676_s25 + $0x8] sm:$0xf] %vm580_vm1, %v1025_v21  ;;  %591 = vst.msk [vmem:[%s1676_s25 + $0x28] sm:$0xf] %vm580_vm1, %v1033_v22  ;;  %v1026_v31 = vpack.c.bf16 %v465_v23, %v465_v23  ;;  %v1034_v32 = vpack.c.bf16 %v497_v24, %v497_v24  ;;  %617 = vrot.lane.b32.xlu0 %v1033_v22, %s1423_s26  ;;  %601 = vrot.lane.b32.xlu1 %v1025_v21, %s1423_s26 }
 0x14e   : > { %581 = vst.msk [vmem:[%s1676_s25] sm:$0xf] %vm580_vm1, %v1023_v27  ;;  %589 = vst.msk [vmem:[%s1676_s25 + $0x20] sm:$0xf] %vm580_vm1, %v1031_v28  ;;  %v1024_v33 = vpack.c.bf16 %v457_v29, %v457_v29  ;;  %v1032_v34 = vpack.c.bf16 %v489_v30, %v489_v30 }
 0x14f   : > { %584 = vst.msk [vmem:[%s1676_s25 + $0xc] sm:$0xf] %vm580_vm1, %v1026_v31  ;;  %592 = vst.msk [vmem:[%s1676_s25 + $0x2c] sm:$0xf] %vm580_vm1, %v1034_v32 }
 0x150   : > { %582 = vst.msk [vmem:[%s1676_s25 + $0x4] sm:$0xf] %vm580_vm1, %v1024_v33  ;;  %590 = vst.msk [vmem:[%s1676_s25 + $0x24] sm:$0xf] %vm580_vm1, %v1032_v34  ;;  %v1062_v35 = vpop.f32.mrb[4].mxu0  ;;  %v1070_v36 = vpop.f32.mrb[4].mxu1 }
 0x151   : > { %665 = vrot.lane.b32.xlu0 %v1025_v21, %s1424_s28  ;;  %603 = vrot.lane.b32.xlu1 %v1026_v31, %s1423_s26  ;;  %v478_v37 = vadd.f32 %v1062_v35, %v976_v10  ;;  %v469_v38 = vpop.f32.mrb[5].mxu0  ;;  %v510_v39 = vadd.f32 %v1070_v36, %v976_v10  ;;  %v501_v40 = vpop.f32.mrb[5].mxu1 }
 0x152   : > { %v470_v41 = vadd.f32 %v976_v10, %v469_v38  ;;  %v1063_v42 = vpop.f32.mrb[6].mxu0  ;;  %v502_v43 = vadd.f32 %v976_v10, %v501_v40  ;;  %v1071_v44 = vpop.f32.mrb[6].mxu1 }
 0x153   : > { %v1029_v45 = vpack.c.bf16 %v478_v37, %v478_v37  ;;  %v481_v46 = vadd.f32 %v1063_v42, %v976_v10  ;;  %v472_v47 = vpop.f32.mrb[7].mxu0  ;;  %v1698_v48 = vpack.c.bf16 %v510_v39, %v510_v39  ;;  %v513_v49 = vadd.f32 %v1071_v44, %v976_v10  ;;  %v504_v50 = vpop.f32.mrb[7].mxu1 }
 0x154   : > { %v1027_v51 = vpack.c.bf16 %v470_v41, %v470_v41  ;;  %v473_v52 = vadd.f32 %v976_v10, %v472_v47  ;;  %v1700_v53 = vpack.c.bf16 %v502_v43, %v502_v43  ;;  %v505_v54 = vadd.f32 %v976_v10, %v504_v50 }
 0x155   : > { %681 = vrot.lane.b32.xlu0 %v1033_v22, %s1424_s28  ;;  %619 = vrot.lane.b32.xlu1 %v1034_v32, %s1423_s26  ;;  %587 = vst.msk [vmem:[%s1676_s25 + $0x18] sm:$0xf] %vm580_vm1, %v1029_v45  ;;  %v1030_v55 = vpack.c.bf16 %v481_v46, %v481_v46  ;;  %595 = vst.msk [vmem:[%s1676_s25 + $0x38] sm:$0xf] %vm580_vm1, %v1698_v48  ;;  %v1709_v56 = vpack.c.bf16 %v513_v49, %v513_v49 }
 0x156   : > { %585 = vst.msk [vmem:[%s1676_s25 + $0x10] sm:$0xf] %vm580_vm1, %v1027_v51  ;;  %v1028_v57 = vpack.c.bf16 %v473_v52, %v473_v52  ;;  %593 = vst.msk [vmem:[%s1676_s25 + $0x30] sm:$0xf] %vm580_vm1, %v1700_v53  ;;  %v1036_v58 = vpack.c.bf16 %v505_v54, %v505_v54 }
 0x157   : > { %588 = vst.msk [vmem:[%s1676_s25 + $0x1c] sm:$0xf] %vm580_vm1, %v1030_v55  ;;  %596 = vst.msk [vmem:[%s1676_s25 + $0x3c] sm:$0xf] %vm580_vm1, %v1709_v56 }
 0x158   : > { %586 = vst.msk [vmem:[%s1676_s25 + $0x14] sm:$0xf] %vm580_vm1, %v1028_v57  ;;  %594 = vst.msk [vmem:[%s1676_s25 + $0x34] sm:$0xf] %vm580_vm1, %v1036_v58 }
 0x159   : > { %667 = vrot.lane.b32.xlu1 %v1026_v31, %s1424_s28  ;;  %597 = vrot.lane.b32.xlu0 %v1023_v27, %s1423_s26 }
 0x15d   : > { %683 = vrot.lane.b32.xlu1 %v1034_v32, %s1424_s28  ;;  %613 = vrot.lane.b32.xlu0 %v1031_v28, %s1423_s26 }
 0x161   : > { %615 = vrot.lane.b32.xlu1 %v1032_v34, %s1423_s26  ;;  %661 = vrot.lane.b32.xlu0 %v1023_v27, %s1424_s28 }
 0x165   : > { %663 = vrot.lane.b32.xlu1 %v1024_v33, %s1424_s28  ;;  %677 = vrot.lane.b32.xlu0 %v1031_v28, %s1424_s28 }
 0x169   : > { %679 = vrot.lane.b32.xlu1 %v1032_v34, %s1424_s28  ;;  %599 = vrot.lane.b32.xlu0 %v1024_v33, %s1423_s26 }
 0x16d   : > { %611 = vrot.lane.b32.xlu1 %v1030_v55, %s1423_s26  ;;  %609 = vrot.lane.b32.xlu0 %v1029_v45, %s1423_s26 }
 0x171   : > { %627 = vrot.lane.b32.xlu1 %v1709_v56, %s1423_s26  ;;  %625 = vrot.lane.b32.xlu0 %v1698_v48, %s1423_s26 }
 0x175   : > { %675 = vrot.lane.b32.xlu1 %v1030_v55, %s1424_s28  ;;  %673 = vrot.lane.b32.xlu0 %v1029_v45, %s1424_s28 }
 0x179   : > { %607 = vrot.lane.b32.xlu1 %v1028_v57, %s1423_s26  ;;  %605 = vrot.lane.b32.xlu0 %v1027_v51, %s1423_s26 }
 0x17d   : > { %623 = vrot.lane.b32.xlu1 %v1036_v58, %s1423_s26  ;;  %621 = vrot.lane.b32.xlu0 %v1700_v53, %s1423_s26 }
 0x181   : > { %671 = vrot.lane.b32.xlu1 %v1028_v57, %s1424_s28  ;;  %669 = vrot.lane.b32.xlu0 %v1027_v51, %s1424_s28 }
 0x182   : > { %1283 = shalt.err (!%p1280_p2)
}
 0x183   : > { %s1284_s25 = scalar_lea.hbm %s1755_s8, 1024  ;;  %s1288_s12 = scalar_lea.hbm %s1965_s3, 2048 }
 0x184   : > { %p1285_p6 = scmp.ne.s32.totalorder %s1755_s8, %s1284_s25  ;;  %p1289_p4 = scmp.lt.u32.totalorder %s1755_s8, %s1965_s3 }
 0x185   : > { %p1290_p9 = scmp.lt.u32.totalorder %s1288_s12, %s1284_s25  ;;  %p1292_p11 = scmp.lt.u32.totalorder %s1284_s25, %s1755_s8 }
 0x186   : > { %p1286_p10 = pnand %p1285_p6, %p1984_p1 }
 0x187   : > { %p1291_p8 = por %p1290_p9, %p1289_p4 }
 0x188   : > { %p1287_p3 = pneg %p1286_p10 }
 0x189   : > { %p1293_p13 = por %p1292_p11, %p1291_p8 }
 0x18b   : > { %p1294_p5 = pnand %p1293_p13, %p1287_p3 }
 0x18d   : > { %1297 = shalt.err (!%p1294_p5)
}
 0x18e   : > { %s1426_s7 = smov 4   ;;  %687 = vrot.lane.b32.xlu1 %v1036_v58, %s1424_s28  ;;  %685 = vrot.lane.b32.xlu0 %v1700_v53, %s1424_s28  ;;  %s1797_s14 = scalar_lea.vmem [#allocation9], %s1655_s10 }
 0x18f   : > { %1086 = dma.vmem_to_hbm [thread:$0]  (%p1984_p1), %s1758_s15, 1024, %s1755_s8, %s726_s21, %s1424_s28, %s1424_s28, %s1426_s7  }
 0x190   : > { %s1804_s30 = scalar_lea.vmem [#allocation11], %s1655_s10  ;;  %s730_s10 = sand.u32 1, %s1490_s24  }
 0x191   : > { %s769_s8 = sshll.u32 %s1797_s14, 4  ;;  %s1856_s25 = scalar_lea.hbm %s1966_s4, %s1746_s29  ;;  %s1858_s8 = int_to_ptr.vmem [resolvable:$true] %s769_s8 }
 0x192   : > { %691 = vrot.lane.b32.xlu1 %v1709_v56, %s1424_s28  ;;  %689 = vrot.lane.b32.xlu0 %v1698_v48, %s1424_s28  ;;  %s1864_s24 = scalar_lea.sflag [#allocation10], %s730_s10  ;;  %s1298_s26 = scalar_lea.vmem %s1858_s8, 1024 }
 0x193   : > { %p1299_p7 = scmp.ne.s32.totalorder %s1858_s8, %s1298_s26  ;;  %s1427_s9 = smov [#allocation9]  }
 0x194   : > { %s1302_s12 = sshll.u32 %s1427_s9, 4  ;;  %s1303_s12 = int_to_ptr.vmem [resolvable:$false] %s1302_s12 }
 0x195   : > { %p1300_p12 = pnand %p1299_p7, %p1984_p1  ;;  %s1304_s13 = scalar_lea.vmem %s1303_s12, 2048 }
 0x196   : > { %p1305_p2 = scmp.lt.s32.totalorder %s1858_s8, %s1303_s12  ;;  %p1306_p6 = scmp.lt.s32.totalorder %s1304_s13, %s1298_s26 }
 0x197   : > { %p1301_p0 = pneg %p1300_p12 }
 0x198   : > { %p1307_p10 = por %p1306_p6, %p1305_p2 }
 0x19a   : > { %p1308_p3 = pnand %p1307_p10, %p1301_p0 }
 0x1bf   : > { %v618_v59 = vpop.permute.xlu0 %617  ;;  %v602_v60 = vpop.permute.xlu1 %601 }
 0x1c0   : > { %655 = vst.msk [vmem:[%s1797_s14 + $0x28] sm:$0xf] %vm580_vm1, %v618_v59  ;;  %647 = vst.msk [vmem:[%s1797_s14 + $0x8] sm:$0xf] %vm580_vm1, %v602_v60 }
 0x1c3   : > { %v666_v61 = vpop.permute.xlu0 %665  ;;  %v604_v62 = vpop.permute.xlu1 %603 }
 0x1c4   : > { %711 = vst.msk [vmem:[%s1804_s30 + $0x8] sm:$0xf] %vm580_vm1, %v666_v61  ;;  %648 = vst.msk [vmem:[%s1797_s14 + $0xc] sm:$0xf] %vm580_vm1, %v604_v62 }
 0x1c7   : > { %v682_v63 = vpop.permute.xlu0 %681  ;;  %v620_v0 = vpop.permute.xlu1 %619 }
 0x1c8   : > { %719 = vst.msk [vmem:[%s1804_s30 + $0x28] sm:$0xf] %vm580_vm1, %v682_v63  ;;  %656 = vst.msk [vmem:[%s1797_s14 + $0x2c] sm:$0xf] %vm580_vm1, %v620_v0 }
 0x1cb   : > { %v668_v1 = vpop.permute.xlu1 %667  ;;  %v598_v2 = vpop.permute.xlu0 %597 }
 0x1cc   : > { %712 = vst.msk [vmem:[%s1804_s30 + $0xc] sm:$0xf] %vm580_vm1, %v668_v1  ;;  %645 = vst.msk [vmem:[%s1797_s14] sm:$0xf] %vm580_vm1, %v598_v2 }
 0x1cf   : > { %v684_v3 = vpop.permute.xlu1 %683  ;;  %v614_v4 = vpop.permute.xlu0 %613 }
 0x1d0   : > { %720 = vst.msk [vmem:[%s1804_s30 + $0x2c] sm:$0xf] %vm580_vm1, %v684_v3  ;;  %653 = vst.msk [vmem:[%s1797_s14 + $0x20] sm:$0xf] %vm580_vm1, %v614_v4 }
 0x1d3   : > { %v616_v5 = vpop.permute.xlu1 %615  ;;  %v662_v6 = vpop.permute.xlu0 %661 }
 0x1d4   : > { %654 = vst.msk [vmem:[%s1797_s14 + $0x24] sm:$0xf] %vm580_vm1, %v616_v5  ;;  %709 = vst.msk [vmem:[%s1804_s30] sm:$0xf] %vm580_vm1, %v662_v6 }
 0x1d7   : > { %v664_v7 = vpop.permute.xlu1 %663  ;;  %v678_v8 = vpop.permute.xlu0 %677 }
 0x1d8   : > { %710 = vst.msk [vmem:[%s1804_s30 + $0x4] sm:$0xf] %vm580_vm1, %v664_v7  ;;  %717 = vst.msk [vmem:[%s1804_s30 + $0x20] sm:$0xf] %vm580_vm1, %v678_v8 }
 0x1db   : > { %v680_v9 = vpop.permute.xlu1 %679  ;;  %v600_v10 = vpop.permute.xlu0 %599 }
 0x1dc   : > { %718 = vst.msk [vmem:[%s1804_s30 + $0x24] sm:$0xf] %vm580_vm1, %v680_v9  ;;  %646 = vst.msk [vmem:[%s1797_s14 + $0x4] sm:$0xf] %vm580_vm1, %v600_v10 }
 0x1df   : > { %v612_v11 = vpop.permute.xlu1 %611  ;;  %v610_v12 = vpop.permute.xlu0 %609 }
 0x1e0   : > { %652 = vst.msk [vmem:[%s1797_s14 + $0x1c] sm:$0xf] %vm580_vm1, %v612_v11  ;;  %651 = vst.msk [vmem:[%s1797_s14 + $0x18] sm:$0xf] %vm580_vm1, %v610_v12 }
 0x1e3   : > { %v628_v13 = vpop.permute.xlu1 %627  ;;  %v626_v14 = vpop.permute.xlu0 %625 }
 0x1e4   : > { %660 = vst.msk [vmem:[%s1797_s14 + $0x3c] sm:$0xf] %vm580_vm1, %v628_v13  ;;  %659 = vst.msk [vmem:[%s1797_s14 + $0x38] sm:$0xf] %vm580_vm1, %v626_v14 }
 0x1e7   : > { %v676_v15 = vpop.permute.xlu1 %675  ;;  %v674_v16 = vpop.permute.xlu0 %673 }
 0x1e8   : > { %716 = vst.msk [vmem:[%s1804_s30 + $0x1c] sm:$0xf] %vm580_vm1, %v676_v15  ;;  %715 = vst.msk [vmem:[%s1804_s30 + $0x18] sm:$0xf] %vm580_vm1, %v674_v16 }
 0x1eb   : > { %v608_v17 = vpop.permute.xlu1 %607  ;;  %v606_v18 = vpop.permute.xlu0 %605 }
 0x1ec   : > { %650 = vst.msk [vmem:[%s1797_s14 + $0x14] sm:$0xf] %vm580_vm1, %v608_v17  ;;  %649 = vst.msk [vmem:[%s1797_s14 + $0x10] sm:$0xf] %vm580_vm1, %v606_v18 }
 0x1ef   : > { %v624_v19 = vpop.permute.xlu1 %623  ;;  %v622_v20 = vpop.permute.xlu0 %621 }
 0x1f0   : > { %658 = vst.msk [vmem:[%s1797_s14 + $0x34] sm:$0xf] %vm580_vm1, %v624_v19  ;;  %657 = vst.msk [vmem:[%s1797_s14 + $0x30] sm:$0xf] %vm580_vm1, %v622_v20 }
 0x1f1   : > { %1311 = shalt.err (!%p1308_p3)
}
 0x1f2   : > { %s1312_s17 = scalar_lea.hbm %s1856_s25, 1024  ;;  %s1316_s15 = scalar_lea.hbm %s1966_s4, 2048 }
 0x1f3   : > { %p1313_p4 = scmp.ne.s32.totalorder %s1856_s25, %s1312_s17  ;;  %p1317_p11 = scmp.lt.u32.totalorder %s1856_s25, %s1966_s4 }
 0x1f4   : > { %p1318_p13 = scmp.lt.u32.totalorder %s1316_s15, %s1312_s17  ;;  %p1320_p7 = scmp.lt.u32.totalorder %s1312_s17, %s1856_s25 }
 0x1f5   : > { %p1314_p9 = pnand %p1313_p4, %p1984_p1 }
 0x1f6   : > { %p1319_p5 = por %p1318_p13, %p1317_p11 }
 0x1f7   : > { %p1315_p8 = pneg %p1314_p9 }
 0x1f8   : > { %p1321_p12 = por %p1320_p7, %p1319_p5 }
 0x1fa   : > { %p1322_p0 = pnand %p1321_p12, %p1315_p8 }
 0x1fc   : > { %1325 = shalt.err (!%p1322_p0)
}
 0x1fd   : > { %1087 = dma.vmem_to_hbm [thread:$0]  (%p1984_p1), %s1858_s8, 1024, %s1856_s25, %s1864_s24, %s1424_s28, %s1424_s28, %s1426_s7   ;;  %v672_v21 = vpop.permute.xlu1 %671  ;;  %v670_v22 = vpop.permute.xlu0 %669 }
 0x1fe   : > { %714 = vst.msk [vmem:[%s1804_s30 + $0x14] sm:$0xf] %vm580_vm1, %v672_v21  ;;  %713 = vst.msk [vmem:[%s1804_s30 + $0x10] sm:$0xf] %vm580_vm1, %v670_v22  ;;  %s787_s26 = sshll.u32 %s1804_s30, 4  ;;  %s1904_s17 = scalar_lea.hbm %s1967_s5, %s1746_s29  ;;  %s1906_s26 = int_to_ptr.vmem [resolvable:$true] %s787_s26 }
 0x1ff   : > { %s1326_s8 = scalar_lea.vmem %s1906_s26, 1024  ;;  %s1428_s25 = smov [#allocation11]  }
 0x200   : > { %p1327_p2 = scmp.ne.s32.totalorder %s1906_s26, %s1326_s8  ;;  %s1330_s14 = sshll.u32 %s1428_s25, 4  ;;  %s1331_s14 = int_to_ptr.vmem [resolvable:$false] %s1330_s14 }
 0x201   : > { %v688_v23 = vpop.permute.xlu1 %687  ;;  %v686_v24 = vpop.permute.xlu0 %685  ;;  %s1332_s29 = scalar_lea.vmem %s1331_s14, 2048  ;;  %p1333_p3 = scmp.lt.s32.totalorder %s1906_s26, %s1331_s14 }
 0x202   : > { %722 = vst.msk [vmem:[%s1804_s30 + $0x34] sm:$0xf] %vm580_vm1, %v688_v23  ;;  %721 = vst.msk [vmem:[%s1804_s30 + $0x30] sm:$0xf] %vm580_vm1, %v686_v24  ;;  %p1328_p6 = pnand %p1327_p2, %p1984_p1  ;;  %p1334_p4 = scmp.lt.s32.totalorder %s1332_s29, %s1326_s8 }
 0x204   : > { %p1329_p10 = pneg %p1328_p6  ;;  %p1335_p9 = por %p1334_p4, %p1333_p3 }
 0x205   : > { %v692_v25 = vpop.permute.xlu1 %691  ;;  %v690_v26 = vpop.permute.xlu0 %689 }
 0x206   : > { %724 = vst.msk [vmem:[%s1804_s30 + $0x3c] sm:$0xf] %vm580_vm1, %v692_v25  ;;  %723 = vst.msk [vmem:[%s1804_s30 + $0x38] sm:$0xf] %vm580_vm1, %v690_v26  ;;  %p1336_p8 = pnand %p1335_p9, %p1329_p10 }
 0x208   : > { %1339 = shalt.err (!%p1336_p8)
}
 0x209   : > { %s1340_s30 = scalar_lea.hbm %s1904_s17, 1024  ;;  %s1344_s21 = scalar_lea.hbm %s1967_s5, 2048 }
 0x20a   : > { %p1341_p11 = scmp.ne.s32.totalorder %s1904_s17, %s1340_s30  ;;  %p1345_p7 = scmp.lt.u32.totalorder %s1904_s17, %s1967_s5 }
 0x20b   : > { %p1346_p12 = scmp.lt.u32.totalorder %s1344_s21, %s1340_s30  ;;  %p1348_p2 = scmp.lt.u32.totalorder %s1340_s30, %s1904_s17 }
 0x20c   : > { %p1342_p13 = pnand %p1341_p11, %p1984_p1 }
 0x20d   : > { %p1347_p0 = por %p1346_p12, %p1345_p7 }
 0x20e   : > { %p1343_p5 = pneg %p1342_p13 }
 0x20f   : > { %p1349_p6 = por %p1348_p2, %p1347_p0 }
 0x211   : > { %p1350_p10 = pnand %p1349_p6, %p1343_p5 }
 0x213   : > { %1353 = shalt.err (!%p1350_p10)
}
 0x214   : > { %1088 = dma.vmem_to_hbm [thread:$0]  (%p1984_p1), %s1906_s26, 1024, %s1904_s17, %s1864_s24, %s1424_s28, %s1424_s28, %s1426_s7  }
 0x215 PF: > { %s802_s13 = sand.u32 1, %s1396_s18   ;;  %p1985_p3 = scmp.ne.s32.totalorder %s1974_s27, 0 }
 0x216   : > { %p1986_p4 = scmp.ge.s32.totalorder %s1416_s23, 2  ;;  %s803_s8 = scalar_lea.sflag [#allocation4], %s802_s13 }
 0x218   : > { %p1104_p9 = pnand %p1986_p4, %p1985_p3 }
 0x21a   : > { %1387 = dma.done.wait (!%p1104_p9), %s803_s8, 1024  }
 0x21b   : > { %1389 = vsyncadd (!%p1104_p9), %s803_s8, 4294966272  ;;  %s1987_s6 = sadd.s32 4294967294, %s1416_s23  }
 0x21c   : > { %s811_s25 = sand.u32 1, %s1987_s6  }
 0x21d   : > { %s812_s14 = scalar_lea.sflag [#allocation10], %s811_s25 }
 0x21e   : > { %1391 = dma.done.wait (!%p1104_p9), %s812_s14, 2048  }
 0x21f   : > { %1393 = vsyncadd (!%p1104_p9), %s812_s14, 4294965248  ;;  %s26_s23 = sadd.s32 1, %s1416_s23   ;;  %s1988_s18 = smov %s1400_s19 }
 0x220   : > { %p23_p1 = scmp.ge.s32.totalorder %s26_s23, 4   ;;  %s1989_s19 = smov %s1404_s20 }
 0x221   : > { %s1990_s20 = smov %s1603_s16  ;;  %s1991_s21 = smov %s1412_s22 }
 0x222   : > { %s1992_s22 = smov %s1994_s11  ;;  %25 = sbr.rel (!%p23_p1) target bundleno = 9 (0x9), region = 117 }
 0x229   :  { %826 = vsyncpa [#allocation3], 1 }
 0x22a   :  { %828 = vsyncpa [#allocation3 + $0x1], 1 }
 0x22b   :  { %829 = vsyncpa [#allocation6], 1 }
 0x22c   :  { %830 = vsyncpa [#allocation4], 1 }
 0x22d   :  { %832 = vsyncpa [#allocation4 + $0x1], 1 }
 0x22e   :  { %833 = vsyncpa [#allocation10], 1 }
 0x22f   :  { %835 = vsyncpa [#allocation10 + $0x1], 1 }

</bundles_post_ra>
